<compile_context>
chip_gen: v5e
topology: v5e:2x2
jax: 0.10.0
libtpu: 0.0.40
codegen_flags: <defaults>
</compile_context>

<pallas_src>
import jax
import jax.numpy as jnp
from jax.experimental import pallas as pl
from jax.experimental.pallas import tpu as pltpu

EPS = 1e-4      # TODO(synk): sihl's EPS constant not shown; EfficientDet uses 1e-4.
BN_EPS = 1e-5   # BatchNorm2d default eps (eval mode, running_mean=0, running_var=1)

_VMEM_LIMIT = 48 * 1024 * 1024   # explicit scoped-VMEM budget; leaves headroom on v7x (64 MiB)


# --------------------------- Pallas kernels ---------------------------------

def _make_fuse_conv_kernel(n_in, K, H, W, Cin, Cout, use_fusion):
    """Fused FastNormalizedFusion (f32 weighted sum) + KxK conv as a single
    im2col bf16 MXU matmul (f32 accumulate) + folded-BN scale/bias + ReLU.
    One grid step == one batch image; conv halo handled in a VMEM scratch."""
    pad = K // 2

    def kernel(*refs):
        i = 0
        if use_fusion:
            wf_ref = refs[0]                      # (n_in,) f32 in SMEM (normalized)
            i = 1
        x_refs = refs[i:i + n_in]                 # each (1, H, W, Cin) bf16
        w_ref, scale_ref, bias_ref, out_ref = refs[i + n_in:i + n_in + 4]
        scratch = refs[i + n_in + 4:]

        if use_fusion:
            fused = wf_ref[0] * x_refs[0][0].astype(jnp.float32)
            for j in range(1, n_in):
                fused = fused + wf_ref[j] * x_refs[j][0].astype(jnp.float32)
            fused = fused.astype(jnp.bfloat16)    # bf16 only at the MXU operand
        else:
            fused = x_refs[0][0]                  # already bf16

        if pad:
            pad_ref = scratch[0]                  # (H+2p, W+2p, Cin) bf16 VMEM scratch
            pad_ref[...] = jnp.zeros_like(pad_ref)
            pad_ref[pad:pad + H, pad:pad + W, :] = fused
            # im2col: fold the K*K taps into the contraction dim (one MXU dot).
            taps = [pad_ref[kh:kh + H, kw:kw + W, :]
                    for kh in range(K) for kw in range(K)]
            patch = jnp.concatenate(taps, axis=-1).reshape(H * W, K * K * Cin)
        else:                                     # K == 1 (lateral conv)
            patch = fused.reshape(H * W, Cin)

        acc = jnp.dot(patch, w_ref[...], preferred_element_type=jnp.float32)
        y = acc * scale_ref[...] + bias_ref[...]  # folded BatchNorm (eval mode), f32
        y = jnp.maximum(y, 0.0)                   # ReLU
        out_ref[0] = y.reshape(H, W, Cout).astype(out_ref.dtype)

    return kernel


_BLUR_1D = (0.25, 0.5, 0.25)   # binomial [1,2,1]/4 per axis


def _make_blur_pool_kernel(H, W, C):
    """Depthwise 3x3 binomial blur, pad 1, stride 2 — the stride is fused:
    only even output rows/cols are computed via strided reads of the padded
    VMEM scratch, and the kernel emits the (H/2, W/2, C) block directly."""
    Ho, Wo = H // 2, W // 2

    def kernel(x_ref, out_ref, pad_ref):
        pad_ref[...] = jnp.zeros_like(pad_ref)            # (H+2, W+2, C) f32
        pad_ref[1:1 + H, 1:1 + W, :] = x_ref[0].astype(jnp.float32)
        acc = jnp.zeros((Ho, Wo, C), jnp.float32)
        for kh in range(3):
            for kw in range(3):
                tap = pad_ref[pl.ds(kh, Ho, stride=2), pl.ds(kw, Wo, stride=2), :]
                acc = acc + (_BLUR_1D[kh] * _BLUR_1D[kw]) * tap
        out_ref[0] = acc.astype(out_ref.dtype)

    return kernel


# --------------------------- kernel wrappers ---------------------------------

def conv_norm_act(inputs, w, scale, bias, fusion_w=None):
    """inputs: list of NHWC arrays (same shape).  If fusion_w is given,
    FastNormalizedFusion over `inputs` happens inside the kernel, followed by
    the KxK conv (im2col MXU matmul) + folded BN + ReLU.  Output is bf16."""
    K = w.shape[0]
    pad = K // 2
    n_in = len(inputs)
    N, H, Wd, Cin = inputs[0].shape
    Cout = w.shape[-1]
    use_fusion = fusion_w is not None

    w2d = w.reshape(K * K * Cin, Cout).astype(jnp.bfloat16)   # matches (kh,kw,cin) tap order
    inputs = [x.astype(jnp.bfloat16) for x in inputs]

    in_specs, args = [], []
    if use_fusion:
        # FastNormalizedFusion weight prep (3 scalar flops on parameters):
        wn = jnp.maximum(fusion_w, 0.0)
        wn = wn / (jnp.sum(wn) + EPS)
        in_specs.append(pl.BlockSpec(memory_space=pltpu.MemorySpace.SMEM))
        args.append(wn.astype(jnp.float32))
    for x in inputs:
        in_specs.append(pl.BlockSpec((1, H, Wd, Cin), lambda n: (n, 0, 0, 0)))
        args.append(x)
    in_specs += [
        pl.BlockSpec((K * K * Cin, Cout), lambda n: (0, 0)),
        pl.BlockSpec((1, Cout), lambda n: (0, 0)),
        pl.BlockSpec((1, Cout), lambda n: (0, 0)),
    ]
    args += [w2d, scale.reshape(1, Cout).astype(jnp.float32),
             bias.reshape(1, Cout).astype(jnp.float32)]

    scratch_shapes = []
    if pad:
        scratch_shapes.append(pltpu.VMEM((H + 2 * pad, Wd + 2 * pad, Cin), jnp.bfloat16))

    kernel = _make_fuse_conv_kernel(n_in, K, H, Wd, Cin, Cout, use_fusion)
    return pl.pallas_call(
        kernel,
        out_shape=jax.ShapeDtypeStruct((N, H, Wd, Cout), jnp.bfloat16),
        grid=(N,),
        in_specs=in_specs,
        out_specs=pl.BlockSpec((1, H, Wd, Cout), lambda n: (n, 0, 0, 0)),
        scratch_shapes=scratch_shapes,
        compiler_params=pltpu.CompilerParams(
            dimension_semantics=("parallel",),
            vmem_limit_bytes=_VMEM_LIMIT),
    )(*args)


def antialiased_downscale(x):
    """Anti-aliased 2x downscale: blur-pool fully inside one Pallas kernel
    (pad + blur + stride-2), emitting the half-resolution tensor directly."""
    N, H, Wd, C = x.shape
    Ho, Wo = H // 2, Wd // 2
    x = x.astype(jnp.bfloat16)
    return pl.pallas_call(
        _make_blur_pool_kernel(H, Wd, C),
        out_shape=jax.ShapeDtypeStruct((N, Ho, Wo, C), jnp.bfloat16),
        grid=(N,),
        in_specs=[pl.BlockSpec((1, H, Wd, C), lambda n: (n, 0, 0, 0))],
        out_specs=pl.BlockSpec((1, Ho, Wo, C), lambda n: (n, 0, 0, 0)),
        scratch_shapes=[pltpu.VMEM((H + 2, Wd + 2, C), jnp.float32)],
        compiler_params=pltpu.CompilerParams(
            dimension_semantics=("parallel",),
            vmem_limit_bytes=_VMEM_LIMIT),
    )(x)


def bilinear_upsample_x2(x):
    # TODO(synk): bilinear x2 kept as JAX gather/lerp glue (matches PyTorch
    # align_corners=False); fusing it into the following up-conv kernel would
    # remove one 4x-size HBM intermediate per top-down node.
    def upsample_axis(y, axis):
        size = y.shape[axis]
        coords = (jnp.arange(2 * size, dtype=jnp.float32) + 0.5) / 2.0 - 0.5
        coords = jnp.maximum(coords, 0.0)
        i0 = jnp.floor(coords).astype(jnp.int32)
        frac = coords - i0.astype(jnp.float32)
        i1 = jnp.minimum(i0 + 1, size - 1)
        a = jnp.take(y, i0, axis=axis)
        b = jnp.take(y, i1, axis=axis)
        sh = [1] * y.ndim
        sh[axis] = 2 * size
        frac = frac.reshape(sh)
        return a * (1.0 - frac) + b * frac

    x = upsample_axis(x, 1)
    x = upsample_axis(x, 2)
    return x.astype(jnp.bfloat16)   # keep inter-node features bf16 in HBM


# --------------------------- parameters --------------------------------------

def _init_cna(key, cin, cout, k):
    w = jax.random.normal(key, (k, k, cin, cout), jnp.float32) * (2.0 / (k * k * cin)) ** 0.5
    scale = jnp.full((cout,), 1.0 / (1.0 + BN_EPS) ** 0.5, jnp.float32)  # gamma=1, var=1
    bias = jnp.zeros((cout,), jnp.float32)                               # beta=0, mean=0
    return {"w": w, "scale": scale, "bias": bias}


def init_bifpn_params(key, in_channels, out_channels, bottom_level, top_level, num_layers):
    keys = iter(jax.random.split(key, 1024))
    params = {}
    params["laterals"] = [_init_cna(next(keys), c, out_channels, 1)
                          for c in in_channels[bottom_level:top_level + 1]]
    params["num_extra_down"] = top_level + 1 - len(in_channels)
    num_levels = top_level - bottom_level + 1
    layers = []
    for _ in range(num_layers):
        lp = {
            "up_fusions": [jnp.ones((2,), jnp.float32) for _ in range(num_levels - 1)],
            "up_convs": [_init_cna(next(keys), out_channels, out_channels, 3)
                         for _ in range(num_levels - 1)],
            "down_fusions": [jnp.ones((3,), jnp.float32) for _ in range(num_levels - 1)],
            "down_convs": [_init_cna(next(keys), out_channels, out_channels, 3)
                           for _ in range(num_levels - 1)],
        }
        lp["down_fusions"][-1] = jnp.ones((2,), jnp.float32)   # as in BiFPNLayer.__init__
        layers.append(lp)
    params["layers"] = layers
    return params


# --------------------------- forward ------------------------------------------

def bifpn_layer_forward(feats, lp):
    num_levels = len(feats)
    # top-down pass
    top_down = [feats[-1]]
    for idx in range(num_levels - 1):
        up = bilinear_upsample_x2(top_down[-1])
        p = lp["up_convs"][idx]
        top_down.append(conv_norm_act([up, feats[-idx - 2]], p["w"], p["scale"], p["bias"],
                                      fusion_w=lp["up_fusions"][idx]))
    # bottom-up pass
    bottom_up = [top_down[-1]]
    for idx in range(num_levels - 1):
        args = [antialiased_downscale(bottom_up[-1]), feats[idx + 1]]
        if idx != num_levels - 1:                     # mirrors `idx != len(inputs) - 1`
            args = args + [top_down[-idx - 2]]
        fw = lp["down_fusions"][idx]
        args = args[:fw.shape[0]]                     # FastNormalizedFusion uses first num_inputs
        p = lp["down_convs"][idx]
        bottom_up.append(conv_norm_act(args, p["w"], p["scale"], p["bias"], fusion_w=fw))
    return bottom_up


def bifpn_forward(params, inputs_nchw, bottom_level, top_level):
    # lateral 1x1 ConvNormAct on levels [bottom_level .. len(in_channels)-1]
    feats = []
    for idx, lat in enumerate(params["laterals"]):
        x = jnp.transpose(inputs_nchw[bottom_level + idx], (0, 2, 3, 1))  # NCHW -> NHWC
        feats.append(conv_norm_act([x], lat["w"], lat["scale"], lat["bias"]))
    # extra pyramid levels
    for _ in range(params["num_extra_down"]):
        feats.append(antialiased_downscale(feats[-1]))
    # stacked BiFPN layers
    for lp in params["layers"]:
        feats = bifpn_layer_forward(feats, lp)
    # back to NCHW f32 at the public boundary
    outs = [jnp.transpose(x, (0, 3, 1, 2)).astype(jnp.float32) for x in feats]
    return list(inputs_nchw[:bottom_level]) + outs + list(inputs_nchw[top_level + 1:])


# --------------------------- demo ---------------------------------------------

if __name__ == "__main__":
    key = jax.random.PRNGKey(0)
    k_in, k_par = jax.random.split(key)

    in_channels = [16, 32, 64]
    out_channels = 128          # lane-dense: fills the 128-lane VPU / MXU output width
    bottom_level, top_level = 1, 3
    num_layers = 2
    N = 2

    shapes = [(N, 16, 32, 32), (N, 32, 16, 16), (N, 64, 8, 8)]   # NCHW pyramid inputs
    ks = jax.random.split(k_in, len(shapes))
    inputs = [jax.random.normal(k, s, jnp.float32) for k, s in zip(ks, shapes)]

    params = init_bifpn_params(k_par, in_channels, out_channels,
                               bottom_level, top_level, num_layers)

    outs = bifpn_forward(params, inputs, bottom_level, top_level)
    outs = jax.block_until_ready(outs)

    expected_channels = in_channels[:bottom_level] + [out_channels] * (top_level - bottom_level + 1)
    assert [o.shape[1] for o in outs] == expected_channels
    assert [o.shape[2] for o in outs] == [32, 16, 8, 4]
    assert all(bool(jnp.isfinite(o).all()) for o in outs)
    print("KERNEL_OK")
</pallas_src>

<mosaic_0001>
module attributes {stable_mosaic.version = 11 : i64} {
  func.func @kernel(%arg0: i32, %arg1: memref<1x16x16x32xbf16, #tpu.memory_space<vmem>>, %arg2: memref<32x128xbf16, #tpu.memory_space<vmem>>, %arg3: memref<1x128xf32, #tpu.memory_space<vmem>>, %arg4: memref<1x128xf32, #tpu.memory_space<vmem>>, %arg5: memref<1x16x16x128xbf16, #tpu.memory_space<vmem>>) attributes {dimension_semantics = [#tpu.dimension_semantics<parallel>], iteration_bounds = array<i64: 2>, scalar_prefetch = 0 : i64, scratch_operands = 0 : i64, tpu.core_type = #tpu.core_type<tc>, window_params = [{transform_indices = @transform_0, window_bounds = array<i64: 1, 16, 16, 32>}, {pipeline_mode = #tpu.pipeline_mode<synchronous>, transform_indices = @transform_1, window_bounds = array<i64: 32, 128>}, {pipeline_mode = #tpu.pipeline_mode<synchronous>, transform_indices = @transform_2, window_bounds = array<i64: 1, 128>}, {pipeline_mode = #tpu.pipeline_mode<synchronous>, transform_indices = @transform_3, window_bounds = array<i64: 1, 128>}, {transform_indices = @transform_4, window_bounds = array<i64: 1, 16, 16, 128>}]} {
    %c0 = arith.constant 0 : index
    %c0_0 = arith.constant 0 : index
    %c0_1 = arith.constant 0 : index
    %c0_2 = arith.constant 0 : index
    %0 = vector.load %arg1[%c0, %c0_0, %c0_1, %c0_2] : memref<1x16x16x32xbf16, #tpu.memory_space<vmem>>, vector<1x16x16x32xbf16>
    %1 = vector.shape_cast %0 : vector<1x16x16x32xbf16> to vector<16x16x32xbf16>
    %2 = vector.shape_cast %1 : vector<16x16x32xbf16> to vector<256x32xbf16>
    %c0_3 = arith.constant 0 : index
    %c0_4 = arith.constant 0 : index
    %3 = vector.load %arg2[%c0_3, %c0_4] : memref<32x128xbf16, #tpu.memory_space<vmem>>, vector<32x128xbf16>
    %cst = arith.constant dense<0.000000e+00> : vector<256x128xf32>
    %4 = tpu.matmul %2, %3, %cst {dimension_numbers = #tpu.dot_dimension_numbers<[1], [0], [0], [1], [0, 0, 1, 1], [], []>} : vector<256x32xbf16>, vector<32x128xbf16>, vector<256x128xf32> -> vector<256x128xf32>
    %c0_5 = arith.constant 0 : index
    %c0_6 = arith.constant 0 : index
    %5 = vector.load %arg3[%c0_5, %c0_6] : memref<1x128xf32, #tpu.memory_space<vmem>>, vector<1x128xf32>
    %6 = vector.broadcast %5 : vector<1x128xf32> to vector<256x128xf32>
    %7 = arith.mulf %4, %6 : vector<256x128xf32>
    %c0_7 = arith.constant 0 : index
    %c0_8 = arith.constant 0 : index
    %8 = vector.load %arg4[%c0_7, %c0_8] : memref<1x128xf32, #tpu.memory_space<vmem>>, vector<1x128xf32>
    %9 = vector.broadcast %8 : vector<1x128xf32> to vector<256x128xf32>
    %10 = arith.addf %7, %9 : vector<256x128xf32>
    %cst_9 = arith.constant 0.000000e+00 : f32
    %11 = vector.broadcast %cst_9 : f32 to vector<256x128xf32>
    %12 = arith.maximumf %10, %11 : vector<256x128xf32>
    %13 = vector.shape_cast %12 : vector<256x128xf32> to vector<16x16x128xf32>
    %14 = arith.truncf %13 : vector<16x16x128xf32> to vector<16x16x128xbf16>
    %c0_10 = arith.constant 0 : index
    %c0_11 = arith.constant 0 : index
    %c0_12 = arith.constant 0 : index
    %c0_13 = arith.constant 0 : index
    %15 = vector.load %arg5[%c0_10, %c0_11, %c0_12, %c0_13] : memref<1x16x16x128xbf16, #tpu.memory_space<vmem>>, vector<1x16x16x128xbf16>
    %16 = vector.shape_cast %15 : vector<1x16x16x128xbf16> to vector<16x16x128xbf16>
    %17 = vector.shape_cast %14 : vector<16x16x128xbf16> to vector<1x16x16x128xbf16>
    tpu.vector_store %arg5[%c0_10, %c0_11, %c0_12, %c0_13], %17 {strides = array<i32>} : memref<1x16x16x128xbf16, #tpu.memory_space<vmem>>, vector<1x16x16x128xbf16>,
    return
  }
  func.func @transform_0(%arg0: i32) -> (i32, i32, i32, i32) {
    %c0_i32 = arith.constant 0 : i32
    %c0_i32_0 = arith.constant 0 : i32
    %c0_i32_1 = arith.constant 0 : i32
    %c0_i32_2 = arith.constant 0 : i32
    return %arg0, %c0_i32, %c0_i32_0, %c0_i32_1 : i32, i32, i32, i32
  }
  func.func @transform_1(%arg0: i32) -> (i32, i32) {
    %c0_i32 = arith.constant 0 : i32
    %c0_i32_0 = arith.constant 0 : i32
    %c0_i32_1 = arith.constant 0 : i32
    return %c0_i32, %c0_i32_0 : i32, i32
  }
  func.func @transform_2(%arg0: i32) -> (i32, i32) {
    %c0_i32 = arith.constant 0 : i32
    %c0_i32_0 = arith.constant 0 : i32
    %c0_i32_1 = arith.constant 0 : i32
    return %c0_i32, %c0_i32_0 : i32, i32
  }
  func.func @transform_3(%arg0: i32) -> (i32, i32) {
    %c0_i32 = arith.constant 0 : i32
    %c0_i32_0 = arith.constant 0 : i32
    %c0_i32_1 = arith.constant 0 : i32
    return %c0_i32, %c0_i32_0 : i32, i32
  }
  func.func @transform_4(%arg0: i32) -> (i32, i32, i32, i32) {
    %c0_i32 = arith.constant 0 : i32
    %c0_i32_0 = arith.constant 0 : i32
    %c0_i32_1 = arith.constant 0 : i32
    %c0_i32_2 = arith.constant 0 : i32
    return %arg0, %c0_i32, %c0_i32_0, %c0_i32_1 : i32, i32, i32, i32
  }
}

</mosaic_0001>

<bundles_post_ra>
// kernel: tpu_custom_call.1
= control target key start
LH: loop header
LB: loop body
LE: loop exit
PB: predicated region body
PF: predicated region fallthrough
CT: control target
= control target key end

     0   :  { %9 = vsyncpa [#allocation3], 0  ;;  %s1494_s0 = inlined_call_operand.hbm [shape: bf16[2,16,16,32], index: 0, kind: input, shape index: {}]   ;;  %s1495_s1 = inlined_call_operand.hbm [shape: bf16[32,128], index: 1, kind: input, shape index: {}]   ;;  %s1496_s2 = inlined_call_operand.vmem [shape: f32[1,128], index: 2, kind: input, shape index: {}]   ;;  %s1497_s3 = inlined_call_operand.vmem [shape: f32[1,128], index: 3, kind: input, shape index: {}]   ;;  %s1498_s4 = inlined_call_operand.hbm [shape: bf16[2,16,16,128], index: 4, kind: output, shape index: {}]  }
   0x1   :  { %11 = vsyncpa [#allocation3 + $0x1], 0 }
   0x2   :  { %12 = vsyncpa [#allocation6], 0 }
   0x3   :  { %13 = vsyncpa [#allocation4], 0 }
   0x4   :  { %15 = vsyncpa [#allocation4 + $0x1], 0  ;;  %s1219_s15 = smov 0   ;;  %s1221_s16 = smov 0  }
   0x5   :  { %s1223_s17 = smov 0   ;;  %s1225_s18 = smov 0  }
   0x6 LB: > { %s1240_s19 = sadd.s32 4294967295, %s1187_s18   ;;  %s769_s20 = sadd.s32 4294967294, %s1187_s18   ;;  %s1187_s18 = sphi %s1225_s18, %s1508_s18   ;;  %s1183_s17 = sphi %s1223_s17, %s1507_s17   ;;  %s1179_s16 = sphi %s1221_s16, %s1506_s16   ;;  %s1175_s15 = sphi %s1219_s15, %s1505_s15  }
   0x7   : > { %p41_p0 = scmp.ne.s32.totalorder %s1179_s16, %s1175_s15  ;;  %p42_p1 = scmp.eq.s32.totalorder %s1240_s19, 0 }
   0x8   : > { %p128_p2 = scmp.eq.s32.totalorder %s1240_s19, 1  ;;  %p134_p3 = scmp.eq.s32.totalorder %s769_s20, 1 }
   0x9   : > { %p1249_p4 = por %p42_p1, %p41_p0  ;;  %p770_p5 = scmp.ge.s32.totalorder %s1187_s18, 1 }
   0xa   : > { %p1254_p6 = por %p134_p3, %p41_p0  ;;  %p141_p7 = scmp.lt.s32.totalorder %s1187_s18, 3 }
   0xb   : > { %s152_s25 = sshll.u32 %s1495_s1, 4  ;;  %s1189_s27 = smov [#allocation5]   ;;  %s153_s25 = int_to_ptr.hbm [resolvable:$true] %s152_s25 }
   0xc   : > { %p1262_p8 = pnand %p770_p5, %p141_p7  ;;  %s154_s28 = sshll.u32 %s1189_s27, 4  ;;  %s155_s28 = int_to_ptr.vmem [resolvable:$true] %s154_s28 }
   0xd   : > { %s1272_s29 = sadd.s32 1, %s1187_s18   ;;  %s1190_s30 = smov 64  }
   0xe   : > { %p1002_p9 = pneg %p1262_p8  ;;  %s1191_s5 = smov 4  }
   0xf   : > { %s25_s6 = ssub.s32 %s1187_s18, %s1272_s29  ;;  %s28_s7 = sadd.s32 1, %s1183_s17 }
  0x10   : > { %p1003_p10 = pnand %p1002_p9, %p42_p1  ;;  %p26_p12 = scmp.eq.s32.totalorder %s25_s6, 0 }
  0x11   : > { %p35_p13 = scmp.ne.s32.totalorder %s1183_s17, %s1179_s16  ;;  %p36_p0 = scmp.eq.s32.totalorder %s1187_s18, 0 }
  0x12   : > { %1005 = dma.hbm_to_vmem [thread:$0]  (!%p1003_p10), %s153_s25, 256, %s155_s28, [#allocation6], %s1190_s30, %s1190_s30, %s1191_s5  }
  0x13   : > { %s1284_s8 = scalar_select %p26_p12, %s1183_s17, %s28_s7  }
  0x14   : > { %p1288_p3 = por %p128_p2, %p35_p13  ;;  %p1015_p5 = scmp.lt.s32.totalorder %s1187_s18, 2 }
  0x15   : > { %s174_s10 = sand.u32 1, %s1183_s17   ;;  %s873_s11 = sshll.u32 %s1187_s18, 7 }
  0x16   : > { %p37_p7 = por %p36_p0, %p35_p13  ;;  %s773_s12 = sshll.u32 %s174_s10, 7 }
  0x17   : > { %s183_s20 = scalar_lea.hbm %s1494_s0, %s873_s11  ;;  %s178_s24 = scalar_lea.vmem [#allocation2], %s773_s12 }
  0x18   : > { %s184_s23 = sshll.u32 %s183_s20, 4  ;;  %s186_s25 = sshll.u32 %s178_s24, 4  ;;  %s185_s23 = int_to_ptr.hbm [resolvable:$true] %s184_s23  ;;  %s187_s25 = int_to_ptr.vmem [resolvable:$true] %s186_s25 }
  0x19   : > { %p1298_p9 = pnand %p1015_p5, %p37_p7  ;;  %s175_s28 = scalar_lea.sflag [#allocation3], %s174_s10 }
  0x1a   : > { %s1087_s6 = sshra.s32 %s185_s23, 4  ;;  %s1094_s12 = scalar_lea.hbm %s1494_s0, 256  ;;  %s1088_s6 = int_to_ptr.hbm [resolvable:$true] %s1087_s6 }
  0x1b   : > { %s1089_s7 = scalar_lea.hbm %s1088_s6, 128  ;;  %p1091_p10 = pneg %p1298_p9 }
  0x1c   : > { %p1090_p2 = scmp.ne.s32.totalorder %s1088_s6, %s1089_s7  ;;  %p1095_p0 = scmp.lt.s32.totalorder %s1088_s6, %s1494_s0 }
  0x1d   : > { %p1096_p5 = scmp.lt.s32.totalorder %s1094_s12, %s1089_s7 }
  0x1e   : > { %p1092_p12 = pnand %p1091_p10, %p1090_p2 }
  0x1f   : > { %p1097_p7 = por %p1096_p5, %p1095_p0 }
  0x20   : > { %p1093_p13 = pneg %p1092_p12 }
  0x22   : > { %p1098_p11 = pnand %p1097_p7, %p1093_p13 }
  0x24   : > { %1101 = shalt.err (!%p1098_p11)
}
  0x25   : > { %1009 = dma.hbm_to_vmem [thread:$0]  (!%p1298_p9), %s185_s23, 2048, %s187_s25, %s175_s28, %s1190_s30, %s1190_s30, %s1191_s5  }
  0x26   : > { %198 = sbr.rel (%p1262_p8) target bundleno = 256 (0x100), region = 36  ;;  %s1318_s10 = sand.u32 (!%p1262_p8), 1, %s1179_s16  }
  0x27   : > { %s777_s24 = sshll.u32 (!%p1262_p8), %s1318_s10, 7  ;;  %s201_s6 = scalar_lea.sflag (!%p1262_p8), [#allocation3], %s1318_s10 }
  0x28   : > { %s1324_s7 = scalar_lea.vmem (!%p1262_p8), [#allocation2], %s777_s24 }
  0x2b   : > { %1162 = dma.done.wait (%p1249_p4), %s201_s6, 2048  }
  0x2c   : > { %1164 = vsyncadd (%p1249_p4), %s201_s6, 4294965248 }
  0x2d   : > { %1166 = dma.done.wait (%p42_p1), [#allocation6], 256  }
  0x2e   : > { %1168 = vsyncadd (%p42_p1), [#allocation6], 4294967040  ;;  %v891_v0 = vld [vmem:[#allocation5 + $0x8] sm:$0xff]  ;;  %v890_v1 = vld [vmem:[#allocation5] sm:$0xff]  ;;  %vm364_vm0 = vcmask 261120   ;;  %s1392_s23 = scalar_lea.vmem [#allocation7], %s777_s24 }
  0x2f   : > { %419 = vmatpush.bf16.msra.mxu0 %v891_v0  ;;  %988 = vmatpush.bf16.msra.mxu1 %v891_v0  ;;  %v874_v2 = vld [vmem:[%s1324_s7] sm:$0xff]  ;;  %v875_v6 = vld [vmem:[%s1324_s7 + $0x8] sm:$0xff]  ;;  %v876_v10 = vld [vmem:[%s1324_s7 + $0x10] sm:$0xff]  ;;  %s892_s25 = sshll.u32 %s1240_s19, 7  ;;  %s683_s19 = sshll.u32 %s1392_s23, 4  ;;  %s684_s19 = int_to_ptr.vmem [resolvable:$true] %s683_s19 }
  0x30   : > { %989 = vmatpush.bf16.msra.mxu2 %v891_v0  ;;  %990 = vmatpush.bf16.msra.mxu3 %v891_v0  ;;  %v878_v3 = vld [vmem:[%s1324_s7 + $0x20] sm:$0xff]  ;;  %v879_v7 = vld [vmem:[%s1324_s7 + $0x28] sm:$0xff]  ;;  %v880_v11 = vld [vmem:[%s1324_s7 + $0x30] sm:$0xff]  ;;  %s682_s11 = scalar_lea.hbm %s1498_s4, %s892_s25  ;;  %s671_s12 = scalar_lea.sflag [#allocation4], %s1318_s10 }
  0x31   : > { %v882_v4 = vld [vmem:[%s1324_s7 + $0x40] sm:$0xff]  ;;  %v883_v8 = vld [vmem:[%s1324_s7 + $0x48] sm:$0xff]  ;;  %v884_v12 = vld [vmem:[%s1324_s7 + $0x50] sm:$0xff]  ;;  %s685_s13 = sshll.u32 %s682_s11, 4  ;;  %s686_s13 = int_to_ptr.hbm [resolvable:$true] %s685_s13 }
  0x32   : > { %v886_v5 = vld [vmem:[%s1324_s7 + $0x60] sm:$0xff]  ;;  %v887_v9 = vld [vmem:[%s1324_s7 + $0x68] sm:$0xff]  ;;  %v888_v13 = vld [vmem:[%s1324_s7 + $0x70] sm:$0xff]  ;;  %s1131_s14 = sshra.s32 %s686_s13, 4  ;;  %s1132_s14 = int_to_ptr.hbm [resolvable:$true] %s1131_s14 }
  0x33   : > { %420 = vmatpush.bf16.msra.mxu0 %v890_v1  ;;  %991 = vmatpush.bf16.msra.mxu1 %v890_v1  ;;  %v877_v14 = vld [vmem:[%s1324_s7 + $0x18] sm:$0xff]  ;;  %v1369_v20 = vld [vmem:[%s1496_s2] ss:$0 sm:$0xff]  ;;  %s1133_s20 = scalar_lea.hbm %s1132_s14, 128  ;;  %p1138_p11 = scmp.lt.s32.totalorder %s1132_s14, %s1498_s4 }
  0x34   : > { %992 = vmatpush.bf16.msra.mxu2 %v890_v1  ;;  %993 = vmatpush.bf16.msra.mxu3 %v890_v1  ;;  %v881_v15 = vld [vmem:[%s1324_s7 + $0x38] sm:$0xff]  ;;  %v1375_v22 = vld [vmem:[%s1497_s3] ss:$0 sm:$0xff]  ;;  %p1134_p1 = scmp.ne.s32.totalorder %s1132_s14, %s1133_s20 }
  0x35   : > { %v885_v16 = vld [vmem:[%s1324_s7 + $0x58] sm:$0xff] }
  0x36   : > { %852 = vmatmul.msk.bf16.vlgmr.msra.gmra.mxu0 %vm364_vm0, %v874_v2  ;;  %856 = vmatmul.msk.bf16.vlgmr.msra.gmra.mxu1 %vm364_vm0, %v878_v3  ;;  %v889_v17 = vld [vmem:[%s1324_s7 + $0x78] sm:$0xff]  ;;  %p1135_p4 = pnand %p1134_p1, %p1288_p3  ;;  %s1137_s7 = scalar_lea.hbm %s1498_s4, 256 }
  0x37   : > { %860 = vmatmul.msk.bf16.vlgmr.msra.gmra.mxu2 %vm364_vm0, %v882_v4  ;;  %864 = vmatmul.msk.bf16.vlgmr.msra.gmra.mxu3 %vm364_vm0, %v886_v5  ;;  %p1139_p9 = scmp.lt.s32.totalorder %s1137_s7, %s1133_s20 }
  0x38   : > { %p1136_p8 = pneg %p1135_p4 }
  0x39   : > { %p1140_p2 = por %p1139_p9, %p1138_p11 }
  0x3b   : > { %p1141_p10 = pnand %p1140_p2, %p1136_p8 }
  0x46   : > { %853 = vmatmul.msk.bf16.gmra.mxu0 %vm364_vm0, %v875_v6  ;;  %857 = vmatmul.msk.bf16.gmra.mxu1 %vm364_vm0, %v879_v7 }
  0x47   : > { %861 = vmatmul.msk.bf16.gmra.mxu2 %vm364_vm0, %v883_v8  ;;  %865 = vmatmul.msk.bf16.gmra.mxu3 %vm364_vm0, %v887_v9 }
  0x56   : > { %854 = vmatmul.msk.bf16.gmra.mxu0 %vm364_vm0, %v876_v10  ;;  %858 = vmatmul.msk.bf16.gmra.mxu1 %vm364_vm0, %v880_v11 }
  0x57   : > { %862 = vmatmul.msk.bf16.gmra.mxu2 %vm364_vm0, %v884_v12  ;;  %866 = vmatmul.msk.bf16.gmra.mxu3 %vm364_vm0, %v888_v13 }
  0x66   : > { %855 = vmatmul.msk.bf16.gmra.mxu0 %vm364_vm0, %v877_v14  ;;  %859 = vmatmul.msk.bf16.gmra.mxu1 %vm364_vm0, %v881_v15 }
  0x67   : > { %863 = vmatmul.msk.bf16.gmra.mxu2 %vm364_vm0, %v885_v16  ;;  %867 = vmatmul.msk.bf16.gmra.mxu3 %vm364_vm0, %v889_v17 }
  0xb3   : > { %v422_v18 = vpop.f32.mrf.mxu0  ;;  %v442_v19 = vpop.f32.mrf.mxu1 }
  0xb4   : > { %v506_v21 = vmul.f32 %v1369_v20, %v422_v18  ;;  %v514_v23 = vmul.f32 %v1369_v20, %v442_v19 }
  0xb6   : > { %v542_v28 = vadd.f32 %v1375_v22, %v506_v21  ;;  %v550_v29 = vadd.f32 %v1375_v22, %v514_v23 }
  0xb8   : > { %v574_v36 = vmax.f32 %v542_v28, 0.0  ;;  %v582_v37 = vmax.f32 %v550_v29, 0.0 }
  0xba   : > { %v462_v24 = vpop.f32.mrf.mxu2  ;;  %v482_v25 = vpop.f32.mrf.mxu3 }
  0xbb   : > { %v424_v26 = vpop.f32.mrf.mxu0  ;;  %v444_v27 = vpop.f32.mrf.mxu1  ;;  %v522_v34 = vmul.f32 %v1369_v20, %v462_v24  ;;  %v530_v35 = vmul.f32 %v1369_v20, %v482_v25 }
  0xbc   : > { %v507_v30 = vmul.f32 %v1369_v20, %v424_v26  ;;  %v515_v31 = vmul.f32 %v1369_v20, %v444_v27 }
  0xbd   : > { %v558_v44 = vadd.f32 %v1375_v22, %v522_v34  ;;  %v566_v45 = vadd.f32 %v1375_v22, %v530_v35 }
  0xbe   : > { %v543_v32 = vadd.f32 %v1375_v22, %v507_v30  ;;  %v551_v33 = vadd.f32 %v1375_v22, %v515_v31 }
  0xbf   : > { %v590_v52 = vmax.f32 %v558_v44, 0.0  ;;  %v598_v53 = vmax.f32 %v566_v45, 0.0 }
  0xc0   : > { %v575_v38 = vmax.f32 %v543_v32, 0.0  ;;  %v583_v39 = vmax.f32 %v551_v33, 0.0 }
  0xc2   : > { %v896_v40 = vpack.c.bf16 %v575_v38, %v574_v36  ;;  %v916_v41 = vpack.c.bf16 %v583_v39, %v582_v37  ;;  %v464_v42 = vpop.f32.mrf.mxu2  ;;  %v484_v43 = vpop.f32.mrf.mxu3 }
  0xc3   : > { %v523_v46 = vmul.f32 %v1369_v20, %v464_v42  ;;  %v531_v47 = vmul.f32 %v1369_v20, %v484_v43  ;;  %v427_v48 = vpop.f32.mrf.mxu0  ;;  %v447_v49 = vpop.f32.mrf.mxu1 }
  0xc4   : > { %897 = vst [vmem:[%s1392_s23] sm:$0xff] %v896_v40   ;;  %v508_v56 = vmul.f32 %v1369_v20, %v427_v48  ;;  %v516_v57 = vmul.f32 %v1369_v20, %v447_v49 }
  0xc5   : > { %976 = vst [vmem:[%s1392_s23 + $0x20] sm:$0xff] %v916_v41   ;;  %v559_v50 = vadd.f32 %v1375_v22, %v523_v46  ;;  %v567_v51 = vadd.f32 %v1375_v22, %v531_v47 }
  0xc6   : > { %v544_v0 = vadd.f32 %v1375_v22, %v508_v56  ;;  %v552_v1 = vadd.f32 %v1375_v22, %v516_v57 }
  0xc7   : > { %v591_v54 = vmax.f32 %v559_v50, 0.0  ;;  %v599_v55 = vmax.f32 %v567_v51, 0.0 }
  0xc8   : > { %v576_v8 = vmax.f32 %v544_v0, 0.0  ;;  %v584_v9 = vmax.f32 %v552_v1, 0.0 }
  0xc9   : > { %v936_v58 = vpack.c.bf16 %v591_v54, %v590_v52  ;;  %v956_v59 = vpack.c.bf16 %v599_v55, %v598_v53 }
  0xca   : > { %v467_v60 = vpop.f32.mrf.mxu2  ;;  %v487_v61 = vpop.f32.mrf.mxu3 }
  0xcb   : > { %980 = vst [vmem:[%s1392_s23 + $0x40] sm:$0xff] %v936_v58   ;;  %v429_v62 = vpop.f32.mrf.mxu0  ;;  %v449_v63 = vpop.f32.mrf.mxu1  ;;  %v524_v6 = vmul.f32 %v1369_v20, %v467_v60  ;;  %v532_v7 = vmul.f32 %v1369_v20, %v487_v61 }
  0xcc   : > { %984 = vst [vmem:[%s1392_s23 + $0x60] sm:$0xff] %v956_v59   ;;  %v509_v2 = vmul.f32 %v1369_v20, %v429_v62  ;;  %v517_v3 = vmul.f32 %v1369_v20, %v449_v63 }
  0xcd   : > { %v560_v16 = vadd.f32 %v1375_v22, %v524_v6  ;;  %v568_v17 = vadd.f32 %v1375_v22, %v532_v7 }
  0xce   : > { %v545_v4 = vadd.f32 %v1375_v22, %v509_v2  ;;  %v553_v5 = vadd.f32 %v1375_v22, %v517_v3 }
  0xcf   : > { %v592_v26 = vmax.f32 %v560_v16, 0.0  ;;  %v600_v27 = vmax.f32 %v568_v17, 0.0 }
  0xd0   : > { %v577_v10 = vmax.f32 %v545_v4, 0.0  ;;  %v585_v11 = vmax.f32 %v553_v5, 0.0 }
  0xd2   : > { %v901_v12 = vpack.c.bf16 %v577_v10, %v576_v8  ;;  %v921_v13 = vpack.c.bf16 %v585_v11, %v584_v9  ;;  %v469_v14 = vpop.f32.mrf.mxu2  ;;  %v489_v15 = vpop.f32.mrf.mxu3 }
  0xd3   : > { %v525_v18 = vmul.f32 %v1369_v20, %v469_v14  ;;  %v533_v19 = vmul.f32 %v1369_v20, %v489_v15  ;;  %v432_v21 = vpop.f32.mrf.mxu0  ;;  %v452_v23 = vpop.f32.mrf.mxu1 }
  0xd4   : > { %973 = vst [vmem:[%s1392_s23 + $0x8] sm:$0xff] %v901_v12   ;;  %v510_v30 = vmul.f32 %v1369_v20, %v432_v21  ;;  %v518_v31 = vmul.f32 %v1369_v20, %v452_v23 }
  0xd5   : > { %977 = vst [vmem:[%s1392_s23 + $0x28] sm:$0xff] %v921_v13   ;;  %v561_v24 = vadd.f32 %v1375_v22, %v525_v18  ;;  %v569_v25 = vadd.f32 %v1375_v22, %v533_v19 }
  0xd6   : > { %v546_v38 = vadd.f32 %v1375_v22, %v510_v30  ;;  %v554_v39 = vadd.f32 %v1375_v22, %v518_v31 }
  0xd7   : > { %v593_v28 = vmax.f32 %v561_v24, 0.0  ;;  %v601_v29 = vmax.f32 %v569_v25, 0.0 }
  0xd8   : > { %v578_v46 = vmax.f32 %v546_v38, 0.0  ;;  %v586_v47 = vmax.f32 %v554_v39, 0.0 }
  0xd9   : > { %v941_v32 = vpack.c.bf16 %v593_v28, %v592_v26  ;;  %v961_v33 = vpack.c.bf16 %v601_v29, %v600_v27 }
  0xda   : > { %v472_v34 = vpop.f32.mrf.mxu2  ;;  %v492_v35 = vpop.f32.mrf.mxu3 }
  0xdb   : > { %981 = vst [vmem:[%s1392_s23 + $0x48] sm:$0xff] %v941_v32   ;;  %v434_v36 = vpop.f32.mrf.mxu0  ;;  %v454_v37 = vpop.f32.mrf.mxu1  ;;  %v526_v44 = vmul.f32 %v1369_v20, %v472_v34  ;;  %v534_v45 = vmul.f32 %v1369_v20, %v492_v35 }
  0xdc   : > { %985 = vst [vmem:[%s1392_s23 + $0x68] sm:$0xff] %v961_v33   ;;  %v511_v40 = vmul.f32 %v1369_v20, %v434_v36  ;;  %v519_v41 = vmul.f32 %v1369_v20, %v454_v37 }
  0xdd   : > { %v562_v54 = vadd.f32 %v1375_v22, %v526_v44  ;;  %v570_v55 = vadd.f32 %v1375_v22, %v534_v45 }
  0xde   : > { %v547_v42 = vadd.f32 %v1375_v22, %v511_v40  ;;  %v555_v43 = vadd.f32 %v1375_v22, %v519_v41 }
  0xdf   : > { %v594_v62 = vmax.f32 %v562_v54, 0.0  ;;  %v602_v63 = vmax.f32 %v570_v55, 0.0 }
  0xe0   : > { %v579_v48 = vmax.f32 %v547_v42, 0.0  ;;  %v587_v49 = vmax.f32 %v555_v43, 0.0 }
  0xe2   : > { %v906_v50 = vpack.c.bf16 %v579_v48, %v578_v46  ;;  %v926_v51 = vpack.c.bf16 %v587_v49, %v586_v47  ;;  %v474_v52 = vpop.f32.mrf.mxu2  ;;  %v494_v53 = vpop.f32.mrf.mxu3 }
  0xe3   : > { %v527_v56 = vmul.f32 %v1369_v20, %v474_v52  ;;  %v535_v57 = vmul.f32 %v1369_v20, %v494_v53  ;;  %v437_v58 = vpop.f32.mrf.mxu0  ;;  %v457_v59 = vpop.f32.mrf.mxu1 }
  0xe4   : > { %974 = vst [vmem:[%s1392_s23 + $0x10] sm:$0xff] %v906_v50   ;;  %v512_v2 = vmul.f32 %v1369_v20, %v437_v58  ;;  %v520_v3 = vmul.f32 %v1369_v20, %v457_v59 }
  0xe5   : > { %978 = vst [vmem:[%s1392_s23 + $0x30] sm:$0xff] %v926_v51   ;;  %v563_v60 = vadd.f32 %v1375_v22, %v527_v56  ;;  %v571_v61 = vadd.f32 %v1375_v22, %v535_v57 }
  0xe6   : > { %v548_v10 = vadd.f32 %v1375_v22, %v512_v2  ;;  %v556_v11 = vadd.f32 %v1375_v22, %v520_v3 }
  0xe7   : > { %v595_v0 = vmax.f32 %v563_v60, 0.0  ;;  %v603_v1 = vmax.f32 %v571_v61, 0.0 }
  0xe8   : > { %v580_v18 = vmax.f32 %v548_v10, 0.0  ;;  %v588_v19 = vmax.f32 %v556_v11, 0.0 }
  0xe9   : > { %v946_v4 = vpack.c.bf16 %v595_v0, %v594_v62  ;;  %v966_v5 = vpack.c.bf16 %v603_v1, %v602_v63 }
  0xea   : > { %v477_v6 = vpop.f32.mrf.mxu2  ;;  %v497_v7 = vpop.f32.mrf.mxu3 }
  0xeb   : > { %982 = vst [vmem:[%s1392_s23 + $0x50] sm:$0xff] %v946_v4   ;;  %v439_v8 = vpop.f32.mrf.mxu0  ;;  %v459_v9 = vpop.f32.mrf.mxu1  ;;  %v528_v16 = vmul.f32 %v1369_v20, %v477_v6  ;;  %v536_v17 = vmul.f32 %v1369_v20, %v497_v7 }
  0xec   : > { %986 = vst [vmem:[%s1392_s23 + $0x70] sm:$0xff] %v966_v5   ;;  %v513_v12 = vmul.f32 %v1369_v20, %v439_v8  ;;  %v521_v13 = vmul.f32 %v1369_v20, %v459_v9 }
  0xed   : > { %v564_v28 = vadd.f32 %v1375_v22, %v528_v16  ;;  %v572_v29 = vadd.f32 %v1375_v22, %v536_v17 }
  0xee   : > { %v549_v14 = vadd.f32 %v1375_v22, %v513_v12  ;;  %v557_v15 = vadd.f32 %v1375_v22, %v521_v13 }
  0xef   : > { %v596_v34 = vmax.f32 %v564_v28, 0.0  ;;  %v604_v35 = vmax.f32 %v572_v29, 0.0 }
  0xf0   : > { %v581_v21 = vmax.f32 %v549_v14, 0.0  ;;  %v589_v23 = vmax.f32 %v557_v15, 0.0 }
  0xf2   : > { %v911_v24 = vpack.c.bf16 %v581_v21, %v580_v18  ;;  %v931_v25 = vpack.c.bf16 %v589_v23, %v588_v19  ;;  %v479_v26 = vpop.f32.mrf.mxu2  ;;  %v499_v27 = vpop.f32.mrf.mxu3 }
  0xf3   : > { %v529_v30 = vmul.f32 %v1369_v20, %v479_v26  ;;  %v537_v31 = vmul.f32 %v1369_v20, %v499_v27 }
  0xf4   : > { %975 = vst [vmem:[%s1392_s23 + $0x18] sm:$0xff] %v911_v24  }
  0xf5   : > { %979 = vst [vmem:[%s1392_s23 + $0x38] sm:$0xff] %v931_v25   ;;  %v565_v32 = vadd.f32 %v1375_v22, %v529_v30  ;;  %v573_v33 = vadd.f32 %v1375_v22, %v537_v31 }
  0xf7   : > { %v597_v36 = vmax.f32 %v565_v32, 0.0  ;;  %v605_v20 = vmax.f32 %v573_v33, 0.0 }
  0xf9   : > { %v951_v37 = vpack.c.bf16 %v597_v36, %v596_v34  ;;  %v971_v38 = vpack.c.bf16 %v605_v20, %v604_v35 }
  0xfb   : > { %983 = vst [vmem:[%s1392_s23 + $0x58] sm:$0xff] %v951_v37  }
  0xfc   : > { %987 = vst [vmem:[%s1392_s23 + $0x78] sm:$0xff] %v971_v38  }
  0xfd   : > { %1144 = shalt.err (!%p1141_p10)
}
  0xfe   : > { %s1192_s10 = smov 64   ;;  %s1193_s30 = smov 4  }
  0xff   : > { %1000 = dma.vmem_to_hbm [thread:$0]  (%p1288_p3), %s684_s19, 2048, %s686_s13, %s671_s12, %s1192_s10, %s1192_s10, %s1193_s30  }
 0x100 PF: > { %s700_s5 = sand.u32 1, %s1175_s15   ;;  %p1504_p12 = scmp.ge.s32.totalorder %s1187_s18, 2 }
 0x101   : > { %s701_s23 = scalar_lea.sflag [#allocation4], %s700_s5 }
 0x102   : > { %p1011_p13 = pnand %p1504_p12, %p1254_p6 }
 0x104   : > { %p1012_p0 = pneg %p1011_p13 }
 0x106   : > { %1170 = dma.done.wait (%p1012_p0), %s701_s23, 2048  }
 0x107   : > { %1172 = vsyncadd (%p1012_p0), %s701_s23, 4294965248  ;;  %p18_p5 = scmp.ge.s32.totalorder %s1272_s29, 4   ;;  %s1505_s15 = smov %s1179_s16 }
 0x108   : > { %s1506_s16 = smov %s1183_s17  ;;  %s1507_s17 = smov %s1284_s8 }
 0x109   : > { %s1508_s18 = smov %s1272_s29  ;;  %20 = sbr.rel (!%p18_p5) target bundleno = 6 (0x6), region = 85 }
 0x10e   :  { %707 = vsyncpa [#allocation3], 1 }
 0x10f   :  { %709 = vsyncpa [#allocation3 + $0x1], 1 }
 0x110   :  { %710 = vsyncpa [#allocation6], 1 }
 0x111   :  { %711 = vsyncpa [#allocation4], 1 }
 0x112   :  { %713 = vsyncpa [#allocation4 + $0x1], 1 }

</bundles_post_ra>
